<compile_context>
chip_gen: v7x
topology: tpu7x:2x2x1
jax: 0.10.0
libtpu: 0.0.40
codegen_flags: <defaults>
</compile_context>

<pallas_src>
import jax
import jax.numpy as jnp
import numpy as np
from jax.experimental import pallas as pl
from jax.experimental.pallas import tpu as pltpu

NEG_SLOPE = 0.01  # F.leaky_relu default


def _round_up(x, m):
    return (x + m - 1) // m * m


def _ssm_lora_kernel(x_ref, h_ref, wa_ref, wb_ref, wc_ref, wd_ref, out_ref):
    # Native-dtype MXU operands; accumulate in f32 via preferred_element_type.
    x = x_ref[...]
    h = h_ref[...]

    # new_x = x @ W_a                      (f32 accumulator)
    new_x = jnp.dot(x, wa_ref[...], preferred_element_type=jnp.float32)

    # h_t1 = h @ (W_c + I) + new_x @ W_d   (identity folded into W_c on host)
    h_t1 = (jnp.dot(h, wc_ref[...], preferred_element_type=jnp.float32)
            + jnp.dot(new_x.astype(wd_ref.dtype), wd_ref[...],
                      preferred_element_type=jnp.float32))

    # min/max normalization along the rank (last) axis, kept in f32
    # (the 1e-8 epsilon underflows in bf16).
    min_val = jnp.min(h_t1, axis=-1, keepdims=True)
    max_val = jnp.max(h_t1, axis=-1, keepdims=True)
    h_norm = (h_t1 - min_val) / (max_val - min_val + jnp.float32(1e-8))

    # dropout -> identity (eval mode); leaky_relu
    act = jnp.where(h_norm >= 0, h_norm, NEG_SLOPE * h_norm)

    # y = (new_x + act) @ (alpha * W_b)    (alpha folded into W_b on host)
    y = jnp.dot((new_x + act).astype(wb_ref.dtype), wb_ref[...],
                preferred_element_type=jnp.float32)

    # Single combined store: [y | h_norm] as one (tile_m, out_dim + rank) slab.
    out_ref[...] = jnp.concatenate(
        [y.astype(out_ref.dtype), h_norm.astype(out_ref.dtype)], axis=-1)


def ssm_lora_forward(x, h_t, W_a, W_b, W_c, W_d, alpha, *, tile_m=512):
    B, S, in_dim = x.shape
    rank = W_a.shape[1]
    out_dim = W_b.shape[1]
    M = B * S
    dtype = x.dtype
    dbytes = jnp.dtype(dtype).itemsize

    # Sublane packing minimum: 8 rows for f32, 16 for bf16, 32 for 8-bit.
    pack = max(8, 32 // dbytes)
    tile_m = _round_up(int(tile_m), pack)
    tile_m = min(tile_m, _round_up(M, pack))   # don't over-tile tiny inputs
    M_pad = _round_up(M, tile_m)

    x2 = x.reshape(M, in_dim)
    h2 = h_t.reshape(M, rank)
    if M_pad != M:
        # Zero-padded tail rows are harmless (norm of zeros -> zeros) and dropped
        # below; avoids the old "M % tile_m == 0" restriction.
        x2 = jnp.pad(x2, ((0, M_pad - M), (0, 0)))
        h2 = jnp.pad(h2, ((0, M_pad - M), (0, 0)))

    # Host-side weight folding (done once, outside the grid loop):
    #   W_b <- alpha * W_b      removes the per-step alpha multiply
    #   W_c <- W_c + I          removes the per-step "+ h_t" add
    wb_eff = (W_b * jnp.asarray(alpha, dtype=jnp.float32)).astype(W_b.dtype)
    wc_eff = (W_c + jnp.eye(rank, dtype=W_c.dtype)).astype(W_c.dtype)

    comb = out_dim + rank
    grid = (M_pad // tile_m,)

    # Advisory cost estimate for XLA scheduling around the custom call.
    flops = 2 * M_pad * (in_dim * rank + 2 * rank * rank + rank * out_dim)
    bytes_accessed = dbytes * (M_pad * (in_dim + rank + comb)
                               + in_dim * rank + rank * out_dim + 2 * rank * rank)
    cost = pl.CostEstimate(flops=flops, transcendentals=0,
                           bytes_accessed=bytes_accessed)

    # VMEM budget: double-buffered input/output tiles + weights + headroom.
    # Never below the 32 MiB default scoped limit; capped so the same tile_m
    # stays safe on v7x (64 MiB physical VMEM per TensorCore).
    tile_bytes = tile_m * (in_dim + rank + comb) * dbytes
    w_bytes = (in_dim * rank + rank * out_dim + 2 * rank * rank) * dbytes
    needed = 2 * 2 * tile_bytes + 2 * w_bytes + (4 << 20)
    vmem_limit = int(min(max(needed, 32 << 20), 56 << 20))

    out = pl.pallas_call(
        _ssm_lora_kernel,
        out_shape=jax.ShapeDtypeStruct((M_pad, comb), dtype),
        grid_spec=pltpu.PrefetchScalarGridSpec(
            num_scalar_prefetch=0,
            grid=grid,
            in_specs=[
                pl.BlockSpec((tile_m, in_dim), lambda i: (i, 0)),   # x rows
                pl.BlockSpec((tile_m, rank), lambda i: (i, 0)),     # h_t rows
                pl.BlockSpec((in_dim, rank), lambda i: (0, 0)),     # W_a (broadcast)
                pl.BlockSpec((rank, out_dim), lambda i: (0, 0)),    # alpha*W_b
                pl.BlockSpec((rank, rank), lambda i: (0, 0)),       # W_c + I
                pl.BlockSpec((rank, rank), lambda i: (0, 0)),       # W_d
            ],
            out_specs=pl.BlockSpec((tile_m, comb), lambda i: (i, 0)),
        ),
        compiler_params=pltpu.CompilerParams(
            dimension_semantics=("parallel",),
            vmem_limit_bytes=vmem_limit),
        cost_estimate=cost,
    )(x2, h2, W_a, wb_eff, wc_eff, W_d)

    y2 = out[:M, :out_dim]
    hn2 = out[:M, out_dim:]
    return y2.reshape(B, S, out_dim), hn2.reshape(B, S, rank)


def ssm_lora_reference(x, h_t, W_a, W_b, W_c, W_d, alpha):
    """Pure-JAX reference of the same forward pass (eval-mode dropout)."""
    new_x = x @ W_a
    h_t1 = h_t @ W_c + new_x @ W_d + h_t
    min_val = jnp.min(h_t1, axis=2, keepdims=True)
    max_val = jnp.max(h_t1, axis=2, keepdims=True)
    h_norm = (h_t1 - min_val) / (max_val - min_val + 1e-8)
    act = jnp.where(h_norm >= 0, h_norm, NEG_SLOPE * h_norm)
    y = alpha * ((new_x + act) @ W_b)
    return y, h_norm


def _run_case(key, B, S, in_dim, rank, out_dim, alpha):
    kx, kh, ka, kb, kc, kd = jax.random.split(key, 6)
    x = jax.random.normal(kx, (B, S, in_dim), dtype=jnp.float32)
    h_t = jax.random.normal(kh, (B, S, rank), dtype=jnp.float32)

    std_dev = 1.0 / jnp.sqrt(jnp.float32(rank))
    W_a = jax.random.normal(ka, (in_dim, rank), dtype=jnp.float32) * std_dev
    # W_b/W_c/W_d are zero-init in the module (adapter no-op); use small
    # deterministic values so the matmul path is exercised non-trivially.
    W_b = jax.random.normal(kb, (rank, out_dim), dtype=jnp.float32) * 0.05
    W_c = jax.random.normal(kc, (rank, rank), dtype=jnp.float32) * 0.05
    W_d = jax.random.normal(kd, (rank, rank), dtype=jnp.float32) * 0.05

    y, h_new = ssm_lora_forward(x, h_t, W_a, W_b, W_c, W_d, alpha)
    jax.block_until_ready((y, h_new))

    y_ref, h_ref = ssm_lora_reference(x, h_t, W_a, W_b, W_c, W_d, alpha)
    np.testing.assert_allclose(np.asarray(y), np.asarray(y_ref),
                               rtol=2e-5, atol=2e-5)
    np.testing.assert_allclose(np.asarray(h_new), np.asarray(h_ref),
                               rtol=2e-5, atol=2e-5)


if __name__ == "__main__":
    key = jax.random.PRNGKey(0)
    k1, k2 = jax.random.split(key)

    # Small, module-consistent shapes.
    _run_case(k1, B=2, S=8, in_dim=32, rank=8, out_dim=32, alpha=16.0)
    # Non-multiple-of-tile row count to exercise the padded-tail path.
    _run_case(k2, B=3, S=5, in_dim=32, rank=8, out_dim=32, alpha=16.0)

    print("KERNEL_OK")
</pallas_src>

<mosaic_0001>
module attributes {stable_mosaic.version = 11 : i64} {
  func.func @_ssm_lora_kernel(%arg0: i32, %arg1: memref<16x32xf32, #tpu.memory_space<vmem>>, %arg2: memref<16x8xf32, #tpu.memory_space<vmem>>, %arg3: memref<32x8xf32, #tpu.memory_space<vmem>>, %arg4: memref<8x32xf32, #tpu.memory_space<vmem>>, %arg5: memref<8x8xf32, #tpu.memory_space<vmem>>, %arg6: memref<8x8xf32, #tpu.memory_space<vmem>>, %arg7: memref<16x40xf32, #tpu.memory_space<vmem>>) attributes {dimension_semantics = [#tpu.dimension_semantics<parallel>], iteration_bounds = array<i64: 1>, scalar_prefetch = 0 : i64, scratch_operands = 0 : i64, tpu.core_type = #tpu.core_type<tc>, window_params = [{transform_indices = @transform_0, window_bounds = array<i64: 16, 32>}, {transform_indices = @transform_1, window_bounds = array<i64: 16, 8>}, {pipeline_mode = #tpu.pipeline_mode<synchronous>, transform_indices = @transform_2, window_bounds = array<i64: 32, 8>}, {pipeline_mode = #tpu.pipeline_mode<synchronous>, transform_indices = @transform_3, window_bounds = array<i64: 8, 32>}, {pipeline_mode = #tpu.pipeline_mode<synchronous>, transform_indices = @transform_4, window_bounds = array<i64: 8, 8>}, {pipeline_mode = #tpu.pipeline_mode<synchronous>, transform_indices = @transform_5, window_bounds = array<i64: 8, 8>}, {transform_indices = @transform_6, window_bounds = array<i64: 16, 40>}]} {
    %c0 = arith.constant 0 : index
    %c0_0 = arith.constant 0 : index
    %0 = vector.load %arg1[%c0, %c0_0] : memref<16x32xf32, #tpu.memory_space<vmem>>, vector<16x32xf32>
    %c0_1 = arith.constant 0 : index
    %c0_2 = arith.constant 0 : index
    %1 = vector.load %arg2[%c0_1, %c0_2] : memref<16x8xf32, #tpu.memory_space<vmem>>, vector<16x8xf32>
    %c0_3 = arith.constant 0 : index
    %c0_4 = arith.constant 0 : index
    %2 = vector.load %arg3[%c0_3, %c0_4] : memref<32x8xf32, #tpu.memory_space<vmem>>, vector<32x8xf32>
    %cst = arith.constant dense<0.000000e+00> : vector<16x8xf32>
    %3 = tpu.matmul %0, %2, %cst {dimension_numbers = #tpu.dot_dimension_numbers<[1], [0], [0], [1], [0, 0, 1, 1], [], []>} : vector<16x32xf32>, vector<32x8xf32>, vector<16x8xf32> -> vector<16x8xf32>
    %c0_5 = arith.constant 0 : index
    %c0_6 = arith.constant 0 : index
    %4 = vector.load %arg5[%c0_5, %c0_6] : memref<8x8xf32, #tpu.memory_space<vmem>>, vector<8x8xf32>
    %cst_7 = arith.constant dense<0.000000e+00> : vector<16x8xf32>
    %5 = tpu.matmul %1, %4, %cst_7 {dimension_numbers = #tpu.dot_dimension_numbers<[1], [0], [0], [1], [0, 0, 1, 1], [], []>} : vector<16x8xf32>, vector<8x8xf32>, vector<16x8xf32> -> vector<16x8xf32>
    %c0_8 = arith.constant 0 : index
    %c0_9 = arith.constant 0 : index
    %6 = vector.load %arg6[%c0_8, %c0_9] : memref<8x8xf32, #tpu.memory_space<vmem>>, vector<8x8xf32>
    %cst_10 = arith.constant dense<0.000000e+00> : vector<16x8xf32>
    %7 = tpu.matmul %3, %6, %cst_10 {dimension_numbers = #tpu.dot_dimension_numbers<[1], [0], [0], [1], [0, 0, 1, 1], [], []>} : vector<16x8xf32>, vector<8x8xf32>, vector<16x8xf32> -> vector<16x8xf32>
    %8 = arith.addf %5, %7 : vector<16x8xf32>
    %cst_11 = arith.constant dense<0x7F800000> : vector<16xf32>
    %9 = vector.multi_reduction <minimumf>, %8, %cst_11 [1] : vector<16x8xf32> to vector<16xf32>
    %10 = vector.shape_cast %9 : vector<16xf32> to vector<16x1xf32>
    %cst_12 = arith.constant dense<0xFF800000> : vector<16xf32>
    %11 = vector.multi_reduction <maximumf>, %8, %cst_12 [1] : vector<16x8xf32> to vector<16xf32>
    %12 = vector.shape_cast %11 : vector<16xf32> to vector<16x1xf32>
    %13 = vector.broadcast %10 : vector<16x1xf32> to vector<16x8xf32>
    %14 = arith.subf %8, %13 : vector<16x8xf32>
    %15 = arith.subf %12, %10 : vector<16x1xf32>
    %cst_13 = arith.constant 9.99999993E-9 : f32
    %16 = vector.broadcast %cst_13 : f32 to vector<16x1xf32>
    %17 = arith.addf %15, %16 : vector<16x1xf32>
    %18 = vector.broadcast %17 : vector<16x1xf32> to vector<16x8xf32>
    %19 = arith.divf %14, %18 : vector<16x8xf32>
    %cst_14 = arith.constant 0.000000e+00 : f32
    %20 = vector.broadcast %cst_14 : f32 to vector<16x8xf32>
    %21 = arith.cmpf oge, %19, %20 : vector<16x8xf32>
    %cst_15 = arith.constant 0.00999999977 : f32
    %22 = vector.broadcast %cst_15 : f32 to vector<16x8xf32>
    %23 = arith.mulf %22, %19 : vector<16x8xf32>
    %24 = arith.select %21, %19, %23 : vector<16x8xi1>, vector<16x8xf32>
    %25 = arith.addf %3, %24 : vector<16x8xf32>
    %c0_16 = arith.constant 0 : index
    %c0_17 = arith.constant 0 : index
    %26 = vector.load %arg4[%c0_16, %c0_17] : memref<8x32xf32, #tpu.memory_space<vmem>>, vector<8x32xf32>
    %cst_18 = arith.constant dense<0.000000e+00> : vector<16x32xf32>
    %27 = tpu.matmul %25, %26, %cst_18 {dimension_numbers = #tpu.dot_dimension_numbers<[1], [0], [0], [1], [0, 0, 1, 1], [], []>} : vector<16x8xf32>, vector<8x32xf32>, vector<16x32xf32> -> vector<16x32xf32>
    %28 = tpu.concatenate %27, %19 in 1 : vector<16x32xf32>, vector<16x8xf32> -> vector<16x40xf32>
    %c0_19 = arith.constant 0 : index
    %c0_20 = arith.constant 0 : index
    %29 = vector.load %arg7[%c0_19, %c0_20] : memref<16x40xf32, #tpu.memory_space<vmem>>, vector<16x40xf32>
    tpu.vector_store %arg7[%c0_19, %c0_20], %28 {strides = array<i32>} : memref<16x40xf32, #tpu.memory_space<vmem>>, vector<16x40xf32>,
    return
  }
  func.func @transform_0(%arg0: i32) -> (i32, i32) {
    %c0_i32 = arith.constant 0 : i32
    %c0_i32_0 = arith.constant 0 : i32
    return %arg0, %c0_i32 : i32, i32
  }
  func.func @transform_1(%arg0: i32) -> (i32, i32) {
    %c0_i32 = arith.constant 0 : i32
    %c0_i32_0 = arith.constant 0 : i32
    return %arg0, %c0_i32 : i32, i32
  }
  func.func @transform_2(%arg0: i32) -> (i32, i32) {
    %c0_i32 = arith.constant 0 : i32
    %c0_i32_0 = arith.constant 0 : i32
    %c0_i32_1 = arith.constant 0 : i32
    return %c0_i32, %c0_i32_0 : i32, i32
  }
  func.func @transform_3(%arg0: i32) -> (i32, i32) {
    %c0_i32 = arith.constant 0 : i32
    %c0_i32_0 = arith.constant 0 : i32
    %c0_i32_1 = arith.constant 0 : i32
    return %c0_i32, %c0_i32_0 : i32, i32
  }
  func.func @transform_4(%arg0: i32) -> (i32, i32) {
    %c0_i32 = arith.constant 0 : i32
    %c0_i32_0 = arith.constant 0 : i32
    %c0_i32_1 = arith.constant 0 : i32
    return %c0_i32, %c0_i32_0 : i32, i32
  }
  func.func @transform_5(%arg0: i32) -> (i32, i32) {
    %c0_i32 = arith.constant 0 : i32
    %c0_i32_0 = arith.constant 0 : i32
    %c0_i32_1 = arith.constant 0 : i32
    return %c0_i32, %c0_i32_0 : i32, i32
  }
  func.func @transform_6(%arg0: i32) -> (i32, i32) {
    %c0_i32 = arith.constant 0 : i32
    %c0_i32_0 = arith.constant 0 : i32
    return %arg0, %c0_i32 : i32, i32
  }
}

</mosaic_0001>

<bundles_post_ra>
// kernel: tpu_custom_call.1
= control target key start
LH: loop header
LB: loop body
LE: loop exit
PB: predicated region body
PF: predicated region fallthrough
CT: control target
= control target key end

     0   :  { %vm32_vm0 = vcmask 261120   ;;  %s609_s0 = inlined_call_operand.vmem [shape: f32[16,32], index: 0, kind: input, shape index: {}]   ;;  %s610_s1 = inlined_call_operand.vmem [shape: f32[16,8], index: 1, kind: input, shape index: {}]   ;;  %s611_s2 = inlined_call_operand.vmem [shape: f32[32,8], index: 2, kind: input, shape index: {}]   ;;  %s612_s3 = inlined_call_operand.vmem [shape: f32[8,32], index: 3, kind: input, shape index: {}]   ;;  %s613_s4 = inlined_call_operand.vmem [shape: f32[8,8], index: 4, kind: input, shape index: {}]   ;;  %s614_s5 = inlined_call_operand.vmem [shape: f32[8,8], index: 5, kind: input, shape index: {}]   ;;  %s615_s6 = inlined_call_operand.hbm [shape: f32[16,40], index: 6, kind: output, shape index: {}]  }
   0x1   :  { %v28_v0 = vld [vmem:[%s611_s2] sm:$0xff]  ;;  %v29_v1 = vld [vmem:[%s611_s2 + $0x8] sm:$0xff]  ;;  %v30_v2 = vld [vmem:[%s611_s2 + $0x10] sm:$0xff] }
   0x2   :  { %v469_v3 = vpack.c.bf16 %v29_v1, %v28_v0  ;;  %v31_v4 = vld [vmem:[%s611_s2 + $0x18] sm:$0xff]  ;;  %v24_v5 = vld [vmem:[%s609_s0] sm:$0xff] }
   0x3   :  { %v473_v6 = vpack.c.bf16 %v31_v4, %v30_v2  ;;  %451 = vmatprep.mubr.msk.f32.mxu0 %vm32_vm0, %v24_v5 }
   0x4   :  { %11 = vsyncpa [#allocation3], 0  ;;  %470 = vmatprep.subr.bf16.mxu0 %v469_v3  ;;  %v25_v7 = vld [vmem:[%s609_s0 + $0x8] sm:$0xff]  ;;  %v115_v8 = vld [vmem:[%s614_s5] sm:$0xff]  ;;  %vm116_vm1 = vcmask 64512   ;;  %vm401_vm4 = vcmask 326656  }
   0x5   :  { %472 = vmatpush3.bf16.msra.mxu0 %v469_v3  ;;  %454 = vmatprep.subr.mxu1 %v115_v8  ;;  %v114_v9 = vld [vmem:[%s613_s4] sm:$0xff]  ;;  %v27_v13 = vld [vmem:[%s610_s1 + $0x8] sm:$0xff] }
   0x6   :  { %474 = vmatprep.subr.bf16.mxu0 %v473_v6  ;;  %455 = vmatpush3.msra.mxu1 %v115_v8  ;;  %v26_v12 = vld [vmem:[%s610_s1] sm:$0xff]  ;;  %s511_s1 = smov 32  }
   0x7   :  { %459 = vmatprep.subr.mxu1 %v114_v9  ;;  %v309_v20 = vld [vmem:[%s612_s3] sm:$0xff]  ;;  %s512_s3 = smov [#allocation2]  }
   0x8   :  { %s409_s15 = sshll.u32 %s512_s3, 4  ;;  %s410_s15 = int_to_ptr.vmem [resolvable:$true] %s409_s15 }
   0x9   :  { %476 = vmatpush3.bf16.msra.mxu0 %v473_v6  ;;  %s487_s16 = scalar_lea.vmem %s410_s15, 256  ;;  %p492_p1 = scmp.lt.s32.totalorder %s410_s15, %s410_s15 }
   0xa   :  { %p488_p0 = scmp.ne.s32.totalorder %s410_s15, %s487_s16  ;;  %p493_p2 = scmp.lt.s32.totalorder %s487_s16, %s487_s16 }
   0xc   :  { %452 = vmatmul.mubr.msk.f32.vlgmr.msra.gmra.mrb[0].mxu0 %vm32_vm0, %v25_v7  ;;  %p494_p3 = por %p493_p2, %p492_p1 }
   0xe   :  { %p495_p4 = pnand %p494_p3, %p488_p0 }
  0xdf   :  { %v453_v10 = vpop.f32.mrb[0].mxu0 }
  0xe0   :  { %v105_v11 = vpop.f32.mrb[1].mxu0 }
  0xe1   :  { %456 = vmatprep.mubr.msk.f32.mxu1 %vm116_vm1, %v105_v11 }
  0xe2   :  { %457 = vmatmul.mubr.msk.f32.vlgmr.msra.gmra.mrb[0].mxu1 %vm116_vm1, %v453_v10 }
  0xe3   :  { %460 = vmatpush3.msra.mxu1 %v114_v9  ;;  %461 = vmatprep.mubr.msk.f32.mxu1 %vm116_vm1, %v26_v12 }
  0xe4   :  { %464 = vmatprep.subr.mxu1 %v309_v20 }
  0xea   :  { %462 = vmatmul.mubr.msk.f32.vlgmr.msra.gmra.mrb[0].mxu1 %vm116_vm1, %v27_v13 }
  0xeb   :  { %465 = vmatpush3.msra.mxu1 %v309_v20 }
 0x1bd   :  { %v463_v14 = vpop.f32.mrb[0].mxu1 }
 0x1be   :  { %v270_v15 = vpop.f32.mrb[1].mxu1  ;;  %v282_v16 = vsel %vm116_vm1, %v463_v14, inf  ;;  %v288_v18 = vsel %vm116_vm1, %v463_v14, -inf }
 0x1bf   :  { %283 = vmin.xlane.f32.xlu1 %v282_v16  ;;  %v279_v17 = vsel %vm116_vm1, %v270_v15, inf  ;;  %v285_v19 = vsel %vm116_vm1, %v270_v15, -inf }
 0x1c0   :  { %280 = vmin.xlane.f32.xlu0 %v279_v17 }
 0x1c3   :  { %289 = vmax.xlane.f32.xlu1 %v288_v18 }
 0x1c4   :  { %286 = vmax.xlane.f32.xlu0 %v285_v19 }
 0x24c   :  { %v284_v21 = vpop.xlane.xlu1 %283 }
 0x24d   :  { %v281_v22 = vpop.xlane.xlu0 %280  ;;  %v292_v29 = vsub.f32 %v463_v14, %v284_v21 }
 0x24e   :  { %v291_v31 = vsub.f32 %v270_v15, %v281_v22 }
 0x250   :  { %v290_v23 = vpop.xlane.xlu1 %289 }
 0x251   :  { %v294_v24 = vsub.f32 %v290_v23, %v284_v21  ;;  %v287_v25 = vpop.xlane.xlu0 %286 }
 0x252   :  { %v293_v26 = vsub.f32 %v287_v25, %v281_v22 }
 0x253   :  { %v296_v27 = vadd.f32 1e-08, %v294_v24 }
 0x254   :  { %v295_v28 = vadd.f32 1e-08, %v293_v26 }
 0x255   :  { %483 = vrcp.f32 %v296_v27 }
 0x256   :  { %485 = vrcp.f32 %v295_v28 }
 0x25f   :  { %v484_v30 = vpop.eup %483 }
 0x260   :  { %v486_v32 = vpop.eup %485  ;;  %v300_v33 = vmul.f32 %v484_v30, %v292_v29 }
 0x261   :  { %v298_v34 = vmul.f32 %v486_v32, %v291_v31 }
 0x262   :  { %395 = vrot.lane.b32.xlu1 %v300_v33, %s511_s1  ;;  %v304_v35 = vmul.f32 0.01, %v300_v33  ;;  %vm302_vm2 = vcmp.ge.f32.partialorder %v300_v33, 0.0 }
 0x263   :  { %393 = vrot.lane.b32.xlu0 %v298_v34, %s511_s1  ;;  %vm301_vm3 = vcmp.ge.f32.partialorder %v298_v34, 0.0  ;;  %v303_v36 = vmul.f32 0.01, %v298_v34 }
 0x264   :  { %v306_v37 = vsel %vm302_vm2, %v300_v33, %v304_v35 }
 0x265   :  { %v305_v38 = vsel %vm301_vm3, %v298_v34, %v303_v36  ;;  %v308_v39 = vadd.f32 %v453_v10, %v306_v37 }
 0x266   :  { %v307_v40 = vadd.f32 %v305_v38, %v105_v11 }
 0x268   :  { %466 = vmatprep.mubr.msk.f32.mxu1 %vm116_vm1, %v307_v40 }
 0x269   :  { %467 = vmatmul.mubr.msk.f32.vlgmr.msra.gmra.mrb[2].mxu1 %vm116_vm1, %v308_v39 }
 0x2d4   :  { %v396_v41 = vpop.permute.xlu1 %395 }
 0x2d5   :  { %v394_v43 = vpop.permute.xlu0 %393 }
 0x33c   :  { %v468_v42 = vpop.f32.mrb[2].mxu1 }
 0x33d   :  { %v400_v44 = vsel %vm32_vm0, %v468_v42, %v396_v41  ;;  %v382_v45 = vpop.f32.mrb[3].mxu1 }
 0x33e   :  { %403 = vst.msk [vmem:[#allocation2 + $0x8] sm:$0xff] %vm401_vm4, %v400_v44  ;;  %v399_v46 = vsel %vm32_vm0, %v382_v45, %v394_v43 }
 0x33f   :  { %402 = vst.msk [vmem:[#allocation2] sm:$0xff] %vm401_vm4, %v399_v46 }
 0x340   :  { %498 = shalt.err (!%p495_p4)
}
 0x341   :  { %s499_s19 = scalar_lea.hbm %s615_s6, 256 }
 0x342   :  { %p500_p5 = scmp.ne.s32.totalorder %s615_s6, %s499_s19  ;;  %p503_p6 = scmp.lt.u32.totalorder %s499_s19, %s615_s6 }
 0x344   :  { %p505_p7 = pnand %p503_p6, %p500_p5 }
 0x346   :  { %508 = shalt.err (!%p505_p7)
}
 0x347   :  { %s513_s24 = smov 128   ;;  %s514_s25 = smov 8  }
 0x348   :  { %415 = dma.vmem_to_hbm [thread:$0]  %s410_s15, 256, %s615_s6, [#allocation3], %s513_s24, %s513_s24, %s514_s25  }
 0x349   :  { %509 = dma.done.wait [#allocation3], 256  }
 0x34a   :  { %510 = vsyncadd [#allocation3], 4294967040 }
 0x34b   :  { %419 = vsyncpa [#allocation3], 1 }

</bundles_post_ra>
